<compile_context>
chip_gen: v6e
topology: v6e:2x2x1
jax: 0.10.0
libtpu: 0.0.40
codegen_flags: <defaults>
</compile_context>

<pallas_src>
import math

import jax
import jax.numpy as jnp
from jax.experimental import pallas as pl
from jax.experimental.pallas import tpu as pltpu


_SQRT_HALF = 0.7071067811865476
_VMEM_TILE_BUDGET = 40 * 1024 * 1024   # conservative: fits v7x's 64 MiB VMEM
_VMEM_LIMIT_CAP = 56 * 1024 * 1024     # below v7x physical VMEM


def _round_up(x, m):
    return ((x + m - 1) // m) * m


def _erf_poly(z):
    # Abramowitz & Stegun 7.1.26, |err| ~ 1.5e-7.  The 1/(1+p*|z|) divide is
    # routed to the EUP (approx reciprocal) so the polynomial costs ~10 VPU
    # ops + 1 EUP recip + 1 EUP exp per element.
    az = jnp.maximum(z, -z)
    t = pl.reciprocal(1.0 + 0.3275911 * az, approx=True)
    poly = ((((1.061405429 * t - 1.453152027) * t + 1.421413741) * t
             - 0.284496736) * t + 0.254829592) * t
    y = 1.0 - poly * jnp.exp(-az * az)
    return jnp.where(z < 0.0, -y, y)


def _gelu_exact(x):
    # Matches torch.nn.GELU() default (approximate='none').
    return 0.5 * x * (1.0 + _erf_poly(x * _SQRT_HALF))


def _ffn_kernel_resident(x_ref, w1_ref, b1_ref, w2_ref, b2_ref, o_ref):
    # 1-D grid over token tiles.  All weight/bias BlockSpecs have constant
    # block indices -> fetched from HBM once, VMEM-resident for every m tile.
    h = jnp.dot(x_ref[...], w1_ref[...], preferred_element_type=jnp.float32)
    h = h + b1_ref[...].astype(jnp.float32)
    g = _gelu_exact(h)
    out = jnp.dot(g.astype(w2_ref.dtype), w2_ref[...],
                  preferred_element_type=jnp.float32)
    o_ref[...] = (out + b2_ref[...].astype(jnp.float32)).astype(o_ref.dtype)


def _ffn_kernel_tiled(x_ref, w1_ref, b1_ref, w2_ref, b2_ref, o_ref, acc_ref):
    # 2-D grid: (token tiles [parallel], hidden tiles [arbitrary reduction]).
    # Only used when n_h >= 2 (weights too big to keep fully resident).
    h_idx = pl.program_id(1)
    last = pl.num_programs(1) - 1

    h = jnp.dot(x_ref[...], w1_ref[...], preferred_element_type=jnp.float32)
    h = h + b1_ref[...].astype(jnp.float32)
    g = _gelu_exact(h)
    partial = jnp.dot(g.astype(w2_ref.dtype), w2_ref[...],
                      preferred_element_type=jnp.float32)

    @pl.when(h_idx == 0)
    def _():
        # Fold the fc2 bias into the accumulator init (saves a pass).
        acc_ref[...] = partial + b2_ref[...].astype(jnp.float32)

    @pl.when(jnp.logical_and(h_idx > 0, h_idx < last))
    def _():
        acc_ref[...] += partial

    @pl.when(jnp.logical_and(h_idx == last, h_idx > 0))
    def _():
        # Write output directly from acc + final partial (no extra acc RMW).
        o_ref[...] = (acc_ref[...] + partial).astype(o_ref.dtype)


def _vmem_estimate(tm, th, C, c_out_p, cb, ob):
    return (2 * th * (C + c_out_p) * cb      # double-buffered weight slabs
            + 2 * tm * C * cb                # x tile (double-buffered)
            + 2 * tm * c_out_p * ob          # out tile (double-buffered)
            + tm * c_out_p * 4               # f32 accumulator scratch
            + 2 * tm * th * 4                # fc1 / GELU f32 intermediates
            + 2 * (th + c_out_p) * 4)        # biases


def _select_tiling(M, C, hidden, c_out_p, cb, ob):
    # Prefer fully resident weights (th == hidden, single reduction step);
    # otherwise tile the hidden dim in >=256-wide, 128-aligned chunks.
    th_cands = [hidden] + [t for t in (1024, 512, 256)
                           if t < hidden and hidden % t == 0]
    # Token tile: as large as the budget allows, but keep >= 2 parallel tiles
    # so v7x's two TensorCores both get work.
    tm_hi = _round_up(M, 8)
    if M > 8:
        tm_hi = min(tm_hi, _round_up(-(-M // 2), 8))
    tm_cands = [t for t in (2048, 1024, 512, 256, 128, 64, 32, 16, 8)
                if t <= tm_hi] or [tm_hi]

    for th in th_cands:
        for tm in tm_cands:
            if _vmem_estimate(tm, th, C, c_out_p, cb, ob) <= _VMEM_TILE_BUDGET:
                return tm, th
    return tm_cands[-1], th_cands[-1]


def feedforward_forward(x, w_fc1, b_fc1, w_fc2, b_fc2, *, tm=None, th=None,
                        use_bf16_matmul=True):
    """FeedForward forward pass (fc1 -> GELU -> fc2), dw_conv=False path.

    x:      (B, N, C)
    w_fc1:  (C, HIDDEN)     b_fc1: (HIDDEN,)
    w_fc2:  (HIDDEN, COUT)  b_fc2: (COUT,)
    """
    B, N, C = x.shape
    hidden = w_fc1.shape[1]
    c_out = w_fc2.shape[1]
    M = B * N
    out_dtype = x.dtype

    # --- MXU feed dtype: bf16 for f32 inputs (f32 accumulation in-kernel) ---
    compute_dtype = (jnp.bfloat16 if (use_bf16_matmul and x.dtype == jnp.float32)
                     else x.dtype)
    cb = jnp.dtype(compute_dtype).itemsize
    ob = jnp.dtype(out_dtype).itemsize

    x2 = x.reshape(M, C).astype(compute_dtype)
    w1 = w_fc1.astype(compute_dtype)
    w2 = w_fc2.astype(compute_dtype)
    b1 = b_fc1.reshape(1, hidden).astype(jnp.float32)
    b2 = b_fc2.reshape(1, c_out).astype(jnp.float32)

    # --- lane-dense output: pad c_out to a multiple of 128 (sliced off) ---
    c_out_p = _round_up(c_out, 128)
    if c_out_p != c_out:
        w2 = jnp.pad(w2, ((0, 0), (0, c_out_p - c_out)))
        b2 = jnp.pad(b2, ((0, 0), (0, c_out_p - c_out)))

    # --- tile selection ---
    auto_tm, auto_th = _select_tiling(M, C, hidden, c_out_p, cb, ob)
    tm = auto_tm if tm is None else _round_up(min(tm, _round_up(M, 8)), 8)
    th = auto_th if th is None else th
    assert hidden % th == 0, "hidden dim must be divisible by the hidden tile"
    assert th == hidden or th % 128 == 0, "hidden tile must be 128-aligned"
    n_h = hidden // th
    n_m = -(-M // tm)            # cdiv; ragged last token tile is masked by Pallas

    est = _vmem_estimate(tm, th, C, c_out_p, cb, ob)
    vmem_limit = int(min(_VMEM_LIMIT_CAP,
                         max(32 * 1024 * 1024, int(est * 1.25))))

    cost = pl.CostEstimate(
        flops=2 * M * hidden * (C + c_out_p),
        transcendentals=M * hidden,
        bytes_accessed=(x2.size * cb + w1.size * cb + w2.size * cb
                        + b1.size * 4 + b2.size * 4 + M * c_out_p * ob))

    if n_h == 1:
        kernel = _ffn_kernel_resident
        grid = (n_m,)
        in_specs = [
            pl.BlockSpec((tm, C), lambda m: (m, 0)),          # x tile
            pl.BlockSpec((C, hidden), lambda m: (0, 0)),      # W1 (resident)
            pl.BlockSpec((1, hidden), lambda m: (0, 0)),      # b1 (resident)
            pl.BlockSpec((hidden, c_out_p), lambda m: (0, 0)),  # W2 (resident)
            pl.BlockSpec((1, c_out_p), lambda m: (0, 0)),     # b2 (resident)
        ]
        out_specs = pl.BlockSpec((tm, c_out_p), lambda m: (m, 0))
        scratch_shapes = ()
        dim_sem = ("parallel",)
        # TODO(synk): pipeline_mode=pl.Buffered(1) on the constant-index weight
        # specs would trim the dead double-buffer on v7x; left at default for
        # compile safety.
    else:
        kernel = _ffn_kernel_tiled
        grid = (n_m, n_h)
        in_specs = [
            pl.BlockSpec((tm, C), lambda m, h: (m, 0)),       # x (resident over h)
            pl.BlockSpec((C, th), lambda m, h: (0, h)),       # W1 slab
            pl.BlockSpec((1, th), lambda m, h: (0, h)),       # b1 slab
            pl.BlockSpec((th, c_out_p), lambda m, h: (h, 0)),  # W2 slab
            pl.BlockSpec((1, c_out_p), lambda m, h: (0, 0)),  # b2 (constant)
        ]
        out_specs = pl.BlockSpec((tm, c_out_p), lambda m, h: (m, 0))
        scratch_shapes = (pltpu.VMEM((tm, c_out_p), jnp.float32),)
        dim_sem = ("parallel", "arbitrary")

    out = pl.pallas_call(
        kernel,
        out_shape=jax.ShapeDtypeStruct((M, c_out_p), out_dtype),
        grid_spec=pltpu.PrefetchScalarGridSpec(
            num_scalar_prefetch=0,
            grid=grid,
            in_specs=in_specs,
            out_specs=out_specs,
            scratch_shapes=scratch_shapes),
        compiler_params=pltpu.CompilerParams(
            dimension_semantics=dim_sem,
            vmem_limit_bytes=vmem_limit),
        cost_estimate=cost,
    )(x2, w1, b1, w2, b2)

    if c_out_p != c_out:
        out = out[:, :c_out]
    return out.reshape(B, N, c_out)


def _reference(x, w_fc1, b_fc1, w_fc2, b_fc2):
    h = x @ w_fc1 + b_fc1
    h = jax.nn.gelu(h, approximate=False)   # exact GELU == torch.nn.GELU default
    return h @ w_fc2 + b_fc2
    # Dropout is identity (eval / p=0).


if __name__ == "__main__":
    def _run_case(name, B, H, W, C, hidden, out_dim=None, tm=None, th=None, seed=0):
        N = H * W
        out_dim = C if out_dim is None else out_dim
        key = jax.random.PRNGKey(seed if seed else 0)
        kx, kw1, kb1, kw2, kb2 = jax.random.split(key, 5)
        bound1 = 1.0 / math.sqrt(C)
        bound2 = 1.0 / math.sqrt(hidden)
        x = jax.random.normal(kx, (B, N, C), dtype=jnp.float32)
        w1 = jax.random.uniform(kw1, (C, hidden), minval=-bound1, maxval=bound1,
                                dtype=jnp.float32)
        b1 = jax.random.uniform(kb1, (hidden,), minval=-bound1, maxval=bound1,
                                dtype=jnp.float32)
        w2 = jax.random.uniform(kw2, (hidden, out_dim), minval=-bound2,
                                maxval=bound2, dtype=jnp.float32)
        b2 = jax.random.uniform(kb2, (out_dim,), minval=-bound2, maxval=bound2,
                                dtype=jnp.float32)

        out = feedforward_forward(x, w1, b1, w2, b2, tm=tm, th=th)
        out = jax.block_until_ready(out)
        ref = _reference(x, w1, b1, w2, b2)
        assert out.shape == ref.shape, (name, out.shape, ref.shape)
        # bf16 MXU feed with f32 accumulation: tolerance loosened accordingly.
        err = float(jnp.max(jnp.abs(out - ref)))
        assert jnp.allclose(out, ref, atol=3e-2, rtol=2e-2), (name, err)

    # 1) Resident-weight path, M divisible by tm (B=2, 8x8 tokens, dim 32).
    _run_case("resident", B=2, H=8, W=8, C=32, hidden=128, seed=0)
    # 2) Ragged last token tile (M=120, tm=64) + lane-padded c_out (dim 48).
    _run_case("ragged", B=2, H=6, W=10, C=48, hidden=192, seed=1)
    # 3) Hidden-dim reduction path (th < hidden) exercising the accumulator.
    _run_case("hidden_tiled", B=2, H=8, W=8, C=32, hidden=512, th=256, seed=2)

    # TODO(synk): dw_conv=True branch (depthwise 3x3 on the hidden activations
    # reshaped to (B, HIDDEN, H, W)) is not implemented; the module default
    # dw_conv=False path is what this kernel covers.

    print("KERNEL_OK")
</pallas_src>

<mosaic_0001>
module attributes {stable_mosaic.version = 11 : i64} {
  func.func @_ffn_kernel_resident(%arg0: i32, %arg1: memref<64x32xbf16, #tpu.memory_space<vmem>>, %arg2: memref<32x128xbf16, #tpu.memory_space<vmem>>, %arg3: memref<1x128xf32, #tpu.memory_space<vmem>>, %arg4: memref<128x128xbf16, #tpu.memory_space<vmem>>, %arg5: memref<1x128xf32, #tpu.memory_space<vmem>>, %arg6: memref<64x128xf32, #tpu.memory_space<vmem>>) attributes {dimension_semantics = [#tpu.dimension_semantics<parallel>], iteration_bounds = array<i64: 2>, scalar_prefetch = 0 : i64, scratch_operands = 0 : i64, tpu.core_type = #tpu.core_type<tc>, window_params = [{transform_indices = @transform_0, window_bounds = array<i64: 64, 32>}, {pipeline_mode = #tpu.pipeline_mode<synchronous>, transform_indices = @transform_1, window_bounds = array<i64: 32, 128>}, {pipeline_mode = #tpu.pipeline_mode<synchronous>, transform_indices = @transform_2, window_bounds = array<i64: 1, 128>}, {pipeline_mode = #tpu.pipeline_mode<synchronous>, transform_indices = @transform_3, window_bounds = array<i64: 128, 128>}, {pipeline_mode = #tpu.pipeline_mode<synchronous>, transform_indices = @transform_4, window_bounds = array<i64: 1, 128>}, {transform_indices = @transform_5, window_bounds = array<i64: 64, 128>}]} {
    %c0 = arith.constant 0 : index
    %c0_0 = arith.constant 0 : index
    %0 = vector.load %arg1[%c0, %c0_0] : memref<64x32xbf16, #tpu.memory_space<vmem>>, vector<64x32xbf16>
    %c0_1 = arith.constant 0 : index
    %c0_2 = arith.constant 0 : index
    %1 = vector.load %arg2[%c0_1, %c0_2] : memref<32x128xbf16, #tpu.memory_space<vmem>>, vector<32x128xbf16>
    %cst = arith.constant dense<0.000000e+00> : vector<64x128xf32>
    %2 = tpu.matmul %0, %1, %cst {dimension_numbers = #tpu.dot_dimension_numbers<[1], [0], [0], [1], [0, 0, 1, 1], [], []>} : vector<64x32xbf16>, vector<32x128xbf16>, vector<64x128xf32> -> vector<64x128xf32>
    %c0_3 = arith.constant 0 : index
    %c0_4 = arith.constant 0 : index
    %3 = vector.load %arg3[%c0_3, %c0_4] : memref<1x128xf32, #tpu.memory_space<vmem>>, vector<1x128xf32>
    %4 = vector.broadcast %3 : vector<1x128xf32> to vector<64x128xf32>
    %5 = arith.addf %2, %4 : vector<64x128xf32>
    %cst_5 = arith.constant 5.000000e-01 : f32
    %6 = vector.broadcast %cst_5 : f32 to vector<64x128xf32>
    %7 = arith.mulf %6, %5 : vector<64x128xf32>
    %cst_6 = arith.constant 0.707106769 : f32
    %8 = vector.broadcast %cst_6 : f32 to vector<64x128xf32>
    %9 = arith.mulf %5, %8 : vector<64x128xf32>
    %cst_7 = arith.constant 0.000000e+00 : f32
    %10 = vector.broadcast %cst_7 : f32 to vector<64x128xf32>
    %11 = arith.subf %10, %9 : vector<64x128xf32>
    %12 = arith.maximumf %9, %11 : vector<64x128xf32>
    %cst_8 = arith.constant 0.327591091 : f32
    %13 = vector.broadcast %cst_8 : f32 to vector<64x128xf32>
    %14 = arith.mulf %13, %12 : vector<64x128xf32>
    %cst_9 = arith.constant 1.000000e+00 : f32
    %15 = vector.broadcast %cst_9 : f32 to vector<64x128xf32>
    %16 = arith.addf %15, %14 : vector<64x128xf32>
    %17 = tpu.reciprocal %16 {approx = true} : vector<64x128xf32> -> vector<64x128xf32>
    %cst_10 = arith.constant 1.06140542 : f32
    %18 = vector.broadcast %cst_10 : f32 to vector<64x128xf32>
    %19 = arith.mulf %18, %17 : vector<64x128xf32>
    %cst_11 = arith.constant 1.45315206 : f32
    %20 = vector.broadcast %cst_11 : f32 to vector<64x128xf32>
    %21 = arith.subf %19, %20 : vector<64x128xf32>
    %22 = arith.mulf %21, %17 : vector<64x128xf32>
    %cst_12 = arith.constant 1.42141378 : f32
    %23 = vector.broadcast %cst_12 : f32 to vector<64x128xf32>
    %24 = arith.addf %22, %23 : vector<64x128xf32>
    %25 = arith.mulf %24, %17 : vector<64x128xf32>
    %cst_13 = arith.constant 0.284496725 : f32
    %26 = vector.broadcast %cst_13 : f32 to vector<64x128xf32>
    %27 = arith.subf %25, %26 : vector<64x128xf32>
    %28 = arith.mulf %27, %17 : vector<64x128xf32>
    %cst_14 = arith.constant 0.254829586 : f32
    %29 = vector.broadcast %cst_14 : f32 to vector<64x128xf32>
    %30 = arith.addf %28, %29 : vector<64x128xf32>
    %31 = arith.mulf %30, %17 : vector<64x128xf32>
    %cst_15 = arith.constant 0.000000e+00 : f32
    %32 = vector.broadcast %cst_15 : f32 to vector<64x128xf32>
    %33 = arith.subf %32, %12 : vector<64x128xf32>
    %34 = arith.mulf %33, %12 : vector<64x128xf32>
    %35 = math.exp %34 : vector<64x128xf32>
    %36 = arith.mulf %31, %35 : vector<64x128xf32>
    %cst_16 = arith.constant 1.000000e+00 : f32
    %37 = vector.broadcast %cst_16 : f32 to vector<64x128xf32>
    %38 = arith.subf %37, %36 : vector<64x128xf32>
    %cst_17 = arith.constant 0.000000e+00 : f32
    %39 = vector.broadcast %cst_17 : f32 to vector<64x128xf32>
    %40 = arith.cmpf olt, %9, %39 : vector<64x128xf32>
    %cst_18 = arith.constant 0.000000e+00 : f32
    %41 = vector.broadcast %cst_18 : f32 to vector<64x128xf32>
    %42 = arith.subf %41, %38 : vector<64x128xf32>
    %43 = arith.select %40, %42, %38 : vector<64x128xi1>, vector<64x128xf32>
    %cst_19 = arith.constant 1.000000e+00 : f32
    %44 = vector.broadcast %cst_19 : f32 to vector<64x128xf32>
    %45 = arith.addf %44, %43 : vector<64x128xf32>
    %46 = arith.mulf %7, %45 : vector<64x128xf32>
    %47 = arith.truncf %46 : vector<64x128xf32> to vector<64x128xbf16>
    %c0_20 = arith.constant 0 : index
    %c0_21 = arith.constant 0 : index
    %48 = vector.load %arg4[%c0_20, %c0_21] : memref<128x128xbf16, #tpu.memory_space<vmem>>, vector<128x128xbf16>
    %cst_22 = arith.constant dense<0.000000e+00> : vector<64x128xf32>
    %49 = tpu.matmul %47, %48, %cst_22 {dimension_numbers = #tpu.dot_dimension_numbers<[1], [0], [0], [1], [0, 0, 1, 1], [], []>} : vector<64x128xbf16>, vector<128x128xbf16>, vector<64x128xf32> -> vector<64x128xf32>
    %c0_23 = arith.constant 0 : index
    %c0_24 = arith.constant 0 : index
    %50 = vector.load %arg5[%c0_23, %c0_24] : memref<1x128xf32, #tpu.memory_space<vmem>>, vector<1x128xf32>
    %51 = vector.broadcast %50 : vector<1x128xf32> to vector<64x128xf32>
    %52 = arith.addf %49, %51 : vector<64x128xf32>
    %c0_25 = arith.constant 0 : index
    %c0_26 = arith.constant 0 : index
    %53 = vector.load %arg6[%c0_25, %c0_26] : memref<64x128xf32, #tpu.memory_space<vmem>>, vector<64x128xf32>
    tpu.vector_store %arg6[%c0_25, %c0_26], %52 {strides = array<i32>} : memref<64x128xf32, #tpu.memory_space<vmem>>, vector<64x128xf32>,
    return
  }
  func.func @transform_0(%arg0: i32) -> (i32, i32) {
    %c0_i32 = arith.constant 0 : i32
    %c0_i32_0 = arith.constant 0 : i32
    return %arg0, %c0_i32 : i32, i32
  }
  func.func @transform_1(%arg0: i32) -> (i32, i32) {
    %c0_i32 = arith.constant 0 : i32
    %c0_i32_0 = arith.constant 0 : i32
    %c0_i32_1 = arith.constant 0 : i32
    return %c0_i32, %c0_i32_0 : i32, i32
  }
  func.func @transform_2(%arg0: i32) -> (i32, i32) {
    %c0_i32 = arith.constant 0 : i32
    %c0_i32_0 = arith.constant 0 : i32
    %c0_i32_1 = arith.constant 0 : i32
    return %c0_i32, %c0_i32_0 : i32, i32
  }
  func.func @transform_3(%arg0: i32) -> (i32, i32) {
    %c0_i32 = arith.constant 0 : i32
    %c0_i32_0 = arith.constant 0 : i32
    %c0_i32_1 = arith.constant 0 : i32
    return %c0_i32, %c0_i32_0 : i32, i32
  }
  func.func @transform_4(%arg0: i32) -> (i32, i32) {
    %c0_i32 = arith.constant 0 : i32
    %c0_i32_0 = arith.constant 0 : i32
    %c0_i32_1 = arith.constant 0 : i32
    return %c0_i32, %c0_i32_0 : i32, i32
  }
  func.func @transform_5(%arg0: i32) -> (i32, i32) {
    %c0_i32 = arith.constant 0 : i32
    %c0_i32_0 = arith.constant 0 : i32
    return %arg0, %c0_i32 : i32, i32
  }
}

</mosaic_0001>

<bundles_post_ra>
// kernel: tpu_custom_call.1
= control target key start
LH: loop header
LB: loop body
LE: loop exit
PB: predicated region body
PF: predicated region fallthrough
CT: control target
= control target key end

     0   :  { %10 = vsyncpa [#allocation3], 0  ;;  %s1357_s0 = inlined_call_operand.vmem [shape: bf16[128,32], index: 0, kind: input, shape index: {}]   ;;  %s1358_s1 = inlined_call_operand.vmem [shape: bf16[32,128], index: 1, kind: input, shape index: {}]   ;;  %s1359_s2 = inlined_call_operand.vmem [shape: f32[1,128], index: 2, kind: input, shape index: {}]   ;;  %s1360_s3 = inlined_call_operand.vmem [shape: bf16[128,128], index: 3, kind: input, shape index: {}]   ;;  %s1361_s4 = inlined_call_operand.vmem [shape: f32[1,128], index: 4, kind: input, shape index: {}]   ;;  %s1362_s5 = inlined_call_operand.hbm [shape: f32[128,128], index: 5, kind: output, shape index: {}]  }
   0x1   :  { %12 = vsyncpa [#allocation3 + $0x1], 0  ;;  %s1081_s18 = smov 0   ;;  %s1083_s19 = smov 0  }
   0x2   :  { %s1085_s20 = smov 0   ;;  %s1087_s21 = smov 0  }
   0x3 LB: > { %s1102_s22 = sadd.s32 4294967295, %s1046_s21   ;;  %s796_s23 = sadd.s32 4294967294, %s1046_s21   ;;  %s1046_s21 = sphi %s1087_s21, %s1368_s21   ;;  %s1042_s20 = sphi %s1085_s20, %s1367_s20   ;;  %s1038_s19 = sphi %s1083_s19, %s1366_s19   ;;  %s1034_s18 = sphi %s1081_s18, %s1365_s18  }
   0x4   : > { %s1106_s24 = sadd.s32 1, %s1046_s21   ;;  %s135_s25 = sadd.s32 1, %s1042_s20 }
   0x5   : > { %s132_s26 = ssub.s32 %s1046_s21, %s1106_s24  ;;  %p145_p0 = scmp.ne.s32.totalorder %s1042_s20, %s1038_s19 }
   0x6   : > { %p133_p1 = scmp.eq.s32.totalorder %s132_s26, 0  ;;  %p146_p2 = scmp.eq.s32.totalorder %s1102_s22, 1 }
   0x7   : > { %p151_p3 = scmp.ne.s32.totalorder %s1038_s19, %s1034_s18  ;;  %p152_p4 = scmp.eq.s32.totalorder %s796_s23, 1 }
   0x8   : > { %s1117_s27 = scalar_select %p133_p1, %s1042_s20, %s135_s25  }
   0x9   : > { %p1119_p5 = por %p146_p2, %p145_p0  ;;  %p1123_p6 = por %p152_p4, %p151_p3 }
   0xa   : > { %p799_p7 = scmp.ge.s32.totalorder %s1046_s21, 1  ;;  %p191_p8 = scmp.lt.s32.totalorder %s1046_s21, 3 }
   0xc   : > { %p192_p9 = pnand %p799_p7, %p191_p8 }
   0xd   : > { %s801_s7 = sshll.u32 (!%p192_p9), %s1102_s22, 3  ;;  %s216_s16 = sand.u32 (!%p192_p9), 1, %s1038_s19  }
   0xe   : > { %195 = sbr.rel (%p192_p9) target bundleno = 510 (0x1fe), region = 40  ;;  %p220_p10 = scmp.lt.s32.totalorder (!%p192_p9), %s801_s7, 15 }
   0xf   : > { %s800_s17 = sshll.u32 (!%p192_p9), %s216_s16, 6  ;;  %s844_s30 = sshll.u32 (!%p192_p9), %s1102_s22, 10 }
  0x10   : > { %s218_s26 = scalar_lea.vmem (!%p192_p9), [#allocation2], %s800_s17  ;;  %s1311_s9 = scalar_lea.hbm (!%p192_p9), %s1362_s5, %s844_s30 }
  0x11   : > { %s734_s6 = sshll.u32 (!%p192_p9), %s218_s26, 4  ;;  %s1317_s22 = scalar_lea.sflag (!%p192_p9), [#allocation3], %s216_s16  ;;  %s1313_s6 = int_to_ptr.vmem [resolvable:$true] %s734_s6 }
  0x12   : > { %s1048_s11 = smov (!%p192_p9), [#allocation2]  }
  0x13   : > { %v940_v0 = vld [vmem:[%s1358_s1 + $0x8] sm:$0xff]   ;;  %v941_v1 = vld [vmem:[%s1358_s1] sm:$0xff]   ;;  %s1370_s7 = smov (!%p220_p10, %s801_s7), 15  ;;  %vm278_vm0 = vcmask 261120   ;;  %v946_v6 = vld [vmem:[%s1360_s3 + $0x38] sm:$0xff]   ;;  %s990_s12 = sshll.u32 %s1048_s11, 4  ;;  %s991_s12 = int_to_ptr.vmem [resolvable:$false] %s990_s12 }
  0x14   : > { %863 = vmatprep.subr.bf16.mxu0 %v940_v0  ;;  %s802_s10 = sshll.u32 %s1370_s7, 2  ;;  %875 = vmatprep.subr.bf16.mxu1 %v946_v6  ;;  %v947_v7 = vld [vmem:[%s1360_s3 + $0x30] sm:$0xff]   ;;  %v948_v8 = vld [vmem:[%s1360_s3 + $0x28] sm:$0xff]   ;;  %v949_v9 = vld [vmem:[%s1360_s3 + $0x20] sm:$0xff]   ;;  %p993_p0 = scmp.lt.s32.totalorder %s1313_s6, %s991_s12 }
  0x15   : > { %864 = vmatpush3.bf16.msra.mxu0 %v940_v0  ;;  %s223_s13 = scalar_lea.vmem %s1357_s0, %s802_s10  ;;  %876 = vmatpush3.bf16.msra.mxu1 %v946_v6  ;;  %v950_v10 = vld [vmem:[%s1360_s3 + $0x18] sm:$0xff]   ;;  %v951_v11 = vld [vmem:[%s1360_s3 + $0x10] sm:$0xff]   ;;  %v952_v12 = vld [vmem:[%s1360_s3 + $0x8] sm:$0xff]   ;;  %s986_s10 = scalar_lea.vmem %s1313_s6, 1024 }
  0x16   : > { %865 = vmatprep.subr.bf16.mxu0 %v941_v1  ;;  %v942_v2 = vld [vmem:[%s223_s13] sm:$0xff]   ;;  %v943_v3 = vld [vmem:[%s223_s13 + $0x8] sm:$0xff]   ;;  %v944_v4 = vld [vmem:[%s223_s13 + $0x10] sm:$0xff]   ;;  %877 = vmatprep.subr.bf16.mxu1 %v947_v7  ;;  %p987_p11 = scmp.ne.s32.totalorder %s1313_s6, %s986_s10 }
  0x17   : > { %867 = vmatprep.mubr.msk.bf16.mxu0 %vm278_vm0, %v942_v2  ;;  %v945_v5 = vld [vmem:[%s223_s13 + $0x18] sm:$0xff]   ;;  %v953_v13 = vld [vmem:[%s1360_s3] sm:$0xff]   ;;  %s992_s13 = scalar_lea.vmem %s991_s12, 2048 }
  0x18   : > { %v803_v14 = vld [vmem:[%s1359_s2] ss:$0 sm:$0xff]  ;;  %p988_p12 = pnand %p987_p11, %p1119_p5  ;;  %p994_p1 = scmp.lt.s32.totalorder %s992_s13, %s986_s10 }
  0x19   : > { %866 = vmatpush3.bf16.msra.mxu0 %v941_v1  ;;  %878 = vmatpush3.bf16.msra.mxu1 %v947_v7 }
  0x1a   : > { %879 = vmatprep.subr.bf16.mxu1 %v948_v8  ;;  %p989_p13 = pneg %p988_p12  ;;  %p995_p2 = por %p994_p1, %p993_p0 }
  0x1c   : > { %868 = vmatmul.mubr.msk.bf16.vlgmr.msra.gmra.mxu0 %vm278_vm0, %v943_v3  ;;  %p996_p3 = pnand %p995_p2, %p989_p13 }
  0x1d   : > { %871 = vmatprep.mubr.msk.bf16.mxu0 %vm278_vm0, %v944_v4  ;;  %880 = vmatpush3.bf16.msra.mxu1 %v948_v8 }
  0x1e   : > { %881 = vmatprep.subr.bf16.mxu1 %v949_v9 }
  0x21   : > { %882 = vmatpush3.bf16.msra.mxu1 %v949_v9 }
  0x22   : > { %883 = vmatprep.subr.bf16.mxu1 %v950_v10 }
  0x24   : > { %872 = vmatmul.mubr.msk.bf16.gmra.mxu0 %vm278_vm0, %v945_v5 }
  0x25   : > { %884 = vmatpush3.bf16.msra.mxu1 %v950_v10 }
  0x26   : > { %885 = vmatprep.subr.bf16.mxu1 %v951_v11 }
  0x29   : > { %886 = vmatpush3.bf16.msra.mxu1 %v951_v11 }
  0x2a   : > { %887 = vmatprep.subr.bf16.mxu1 %v952_v12 }
  0x2d   : > { %888 = vmatpush3.bf16.msra.mxu1 %v952_v12 }
  0x2e   : > { %889 = vmatprep.subr.bf16.mxu1 %v953_v13 }
  0x31   : > { %890 = vmatpush3.bf16.msra.mxu1 %v953_v13 }
  0xdc   : > { %v869_v15 = vpop.f32.mrf.mxu0 }
  0xdd   : > { %v1166_v16 = vadd.f32 %v869_v15, %v803_v14 }
  0xde   : > { %v325_v17 = vpop.f32.mrf.mxu0 }
  0xdf   : > { %v1169_v18 = vmul.f32 0.70710677, %v1166_v16  ;;  %v1171_v19 = vadd.f32 %v803_v14, %v325_v17 }
  0xe0   : > { %v870_v20 = vpop.f32.mrf.mxu0 }
  0xe1   : > { %v374_v21 = vsub.f32 0.0, %v1169_v18  ;;  %v1175_v22 = vmul.f32 0.70710677, %v1171_v19  ;;  %v1177_v23 = vadd.f32 %v870_v20, %v803_v14  ;;  %vm534_vm2 = vcmp.lt.f32.partialorder %v1169_v18, 0.0 }
  0xe2   : > { %v328_v24 = vpop.f32.mrf.mxu0 }
  0xe3   : > { %v382_v25 = vmax.f32 %v1169_v18, %v374_v21  ;;  %v372_v26 = vsub.f32 0.0, %v1175_v22  ;;  %v1181_v27 = vadd.f32 %v803_v14, %v328_v24  ;;  %v1184_v28 = vmul.f32 0.70710677, %v1177_v23 }
  0xe4   : > { %v873_v29 = vpop.f32.mrf.mxu0  ;;  %vm532_vm1 = vcmp.lt.f32.partialorder %v1175_v22, 0.0 }
  0xe5   : > { %v390_v30 = vmul.f32 0.3275911, %v382_v25  ;;  %v380_v31 = vmax.f32 %v1175_v22, %v372_v26  ;;  %v375_v32 = vsub.f32 0.0, %v1184_v28  ;;  %v1189_v33 = vmul.f32 0.70710677, %v1181_v27 }
  0xe6   : > { %v1191_v34 = vadd.f32 %v873_v29, %v803_v14  ;;  %v341_v35 = vpop.f32.mrf.mxu0  ;;  %v486_v51 = vsub.f32 0.0, %v382_v25  ;;  %vm535_vm3 = vcmp.lt.f32.partialorder %v1184_v28, 0.0 }
  0xe7   : > { %v398_v36 = vadd.f32 1.0, %v390_v30  ;;  %v388_v37 = vmul.f32 0.3275911, %v380_v31  ;;  %v383_v38 = vmax.f32 %v1184_v28, %v375_v32  ;;  %v373_v39 = vsub.f32 0.0, %v1189_v33 }
  0xe8   : > { %v1196_v40 = vmul.f32 0.70710677, %v1191_v34  ;;  %v874_v42 = vpop.f32.mrf.mxu0  ;;  %v1200_v46 = vadd.f32 %v803_v14, %v341_v35  ;;  %v484_v58 = vsub.f32 0.0, %v380_v31  ;;  %v494_v60 = vmul.f32 %v486_v51, %v382_v25 }
  0xe9   : > { %954 = vrcp.f32 %v398_v36  ;;  %v396_v41 = vadd.f32 1.0, %v388_v37  ;;  %v391_v43 = vmul.f32 0.3275911, %v383_v38  ;;  %v381_v44 = vmax.f32 %v1189_v33, %v373_v39 }
  0xea   : > { %v378_v45 = vsub.f32 0.0, %v1196_v40  ;;  %v344_v50 = vpop.f32.mrf.mxu0  ;;  %v1204_v53 = vmul.f32 0.70710677, %v1200_v46  ;;  %v1206_v55 = vadd.f32 %v874_v42, %v803_v14  ;;  %v487_v61 = vsub.f32 0.0, %v383_v38 }
  0xeb   : > { %956 = vrcp.f32 %v396_v41  ;;  %v399_v47 = vadd.f32 1.0, %v391_v43  ;;  %v389_v48 = vmul.f32 0.3275911, %v381_v44  ;;  %v1209_v57 = vadd.f32 %v803_v14, %v344_v50 }
  0xec   : > { %v386_v49 = vmax.f32 %v1196_v40, %v378_v45  ;;  %v376_v56 = vsub.f32 0.0, %v1204_v53  ;;  %v1213_v63 = vmul.f32 0.70710677, %v1206_v55  ;;  %v492_v3 = vmul.f32 %v484_v58, %v380_v31 }
  0xed   : > { %958 = vrcp.f32 %v399_v47  ;;  %v397_v52 = vadd.f32 1.0, %v389_v48  ;;  %v1216_v0 = vmul.f32 0.70710677, %v1209_v57  ;;  %v504_v6 = vmul.f32 1.442695, %v494_v60 }
  0xee   : > { %v394_v54 = vmul.f32 0.3275911, %v386_v49  ;;  %v384_v62 = vmax.f32 %v1204_v53, %v376_v56  ;;  %v379_v2 = vsub.f32 0.0, %v1213_v63  ;;  %v495_v7 = vmul.f32 %v487_v61, %v383_v38 }
  0xef   : > { %960 = vrcp.f32 %v397_v52  ;;  %v377_v4 = vsub.f32 0.0, %v1216_v0  ;;  %v485_v11 = vsub.f32 0.0, %v381_v44  ;;  %v490_v13 = vsub.f32 0.0, %v386_v49 }
  0xf0   : > { %v402_v59 = vadd.f32 1.0, %v394_v54  ;;  %v392_v1 = vmul.f32 0.3275911, %v384_v62  ;;  %v387_v9 = vmax.f32 %v1213_v63, %v379_v2  ;;  %v500_v20 = vmul.f32 1.442695, %v492_v3 }
  0xf1   : > { %v385_v12 = vmax.f32 %v1216_v0, %v377_v4  ;;  %v506_v24 = vmul.f32 1.442695, %v495_v7  ;;  %v493_v31 = vmul.f32 %v485_v11, %v381_v44  ;;  %v488_v32 = vsub.f32 0.0, %v384_v62 }
  0xf2   : > { %962 = vrcp.f32 %v402_v59  ;;  %v400_v8 = vadd.f32 1.0, %v392_v1  ;;  %v395_v14 = vmul.f32 0.3275911, %v387_v9  ;;  %v498_v37 = vmul.f32 %v490_v13, %v386_v49 }
  0xf3   : > { %v393_v21 = vmul.f32 0.3275911, %v385_v12  ;;  %v502_v47 = vmul.f32 1.442695, %v493_v31  ;;  %v496_v48 = vmul.f32 %v488_v32, %v384_v62  ;;  %v491_v56 = vsub.f32 0.0, %v387_v9 }
  0xf4   : > { %964 = vrcp.f32 %v400_v8  ;;  %v403_v25 = vadd.f32 1.0, %v395_v14  ;;  %v512_v49 = vmul.f32 1.442695, %v498_v37  ;;  %v489_v58 = vsub.f32 0.0, %v385_v12 }
  0xf5   : > { %966 = vpow2.f32 %v504_v6  ;;  %v401_v35 = vadd.f32 1.0, %v393_v21  ;;  %v508_v2 = vmul.f32 1.442695, %v496_v48  ;;  %v499_v11 = vmul.f32 %v491_v56, %v387_v9 }
  0xf6   : > { %v1220_v5 = vpop.eup %954  ;;  %968 = vrcp.f32 %v403_v25  ;;  %v497_v13 = vmul.f32 %v489_v58, %v385_v12  ;;  %vm533_vm4 = vcmp.lt.f32.partialorder %v1189_v33, 0.0  ;;  %vm536_vm5 = vcmp.lt.f32.partialorder %v1204_v53, 0.0 }
  0xf7   : > { %v414_v10 = vmul.f32 1.0614054, %v1220_v5  ;;  %970 = vrcp.f32 %v401_v35  ;;  %vm538_vm6 = vcmp.lt.f32.partialorder %v1196_v40, 0.0  ;;  %vm539_vm7 = vcmp.lt.f32.partialorder %v1213_v63, 0.0 }
  0xf8   : > { %v1225_v15 = vpop.eup %956  ;;  %972 = vpow2.f32 %v500_v20  ;;  %vm537_vm8 = vcmp.lt.f32.partialorder %v1216_v0, 0.0  ;;  %v363_v40 = vmul.f32 0.5, %v1206_v55 }
  0xf9   : > { %v816_v17 = vadd.f32 -1.4531521, %v414_v10  ;;  %v412_v26 = vmul.f32 1.0614054, %v1225_v15  ;;  %974 = vpow2.f32 %v506_v24 }
  0xfa   : > { %v1228_v29 = vpop.eup %958  ;;  %976 = vpow2.f32 %v502_v47 }
  0xfb   : > { %v430_v30 = vmul.f32 %v1220_v5, %v816_v17  ;;  %v415_v36 = vmul.f32 1.0614054, %v1228_v29  ;;  %v814_v38 = vadd.f32 -1.4531521, %v412_v26  ;;  %978 = vpow2.f32 %v512_v49 }
  0xfc   : > { %v1232_v41 = vpop.eup %960  ;;  %980 = vpow2.f32 %v508_v2 }
  0xfd   : > { %v438_v39 = vadd.f32 1.4214138, %v430_v30  ;;  %v817_v42 = vadd.f32 -1.4531521, %v415_v36  ;;  %v428_v43 = vmul.f32 %v1225_v15, %v814_v38  ;;  %v413_v44 = vmul.f32 1.0614054, %v1232_v41 }
  0xfe   : > { %v1252_v30 = vmul.f32 0.5, %v1171_v19  ;;  %v514_v38 = vmul.f32 1.442695, %v499_v11 }
  0xff   : > { %v446_v45 = vmul.f32 %v1220_v5, %v438_v39  ;;  %v431_v50 = vmul.f32 %v1228_v29, %v817_v42  ;;  %v436_v51 = vadd.f32 1.4214138, %v428_v43  ;;  %v1238_v52 = vpop.eup %962  ;;  %v815_v59 = vadd.f32 -1.4531521, %v413_v44 }
 0x100   : > { %v418_v61 = vmul.f32 1.0614054, %v1238_v52  ;;  %v510_v39 = vmul.f32 1.442695, %v497_v13  ;;  %982 = vpow2.f32 %v514_v38 }
 0x101   : > { %v824_v54 = vadd.f32 -0.28449672, %v446_v45  ;;  %v439_v60 = vadd.f32 1.4214138, %v431_v50  ;;  %v444_v1 = vmul.f32 %v1225_v15, %v436_v51  ;;  %v429_v3 = vmul.f32 %v1232_v41, %v815_v59  ;;  %v1245_v8 = vpop.eup %964 }
 0x102   : > { %v820_v6 = vadd.f32 -1.4531521, %v418_v61  ;;  %v416_v21 = vmul.f32 1.0614054, %v1245_v8  ;;  %v967_v25 = vpop.eup %966  ;;  %984 = vpow2.f32 %v510_v39 }
 0x103   : > { %v462_v62 = vmul.f32 %v1220_v5, %v824_v54  ;;  %v447_v4 = vmul.f32 %v1228_v29, %v439_v60  ;;  %v822_v7 = vadd.f32 -0.28449672, %v444_v1  ;;  %v437_v14 = vadd.f32 1.4214138, %v429_v3  ;;  %v1256_v36 = vpop.eup %968 }
 0x104   : > { %v434_v20 = vmul.f32 %v1238_v52, %v820_v6  ;;  %v818_v32 = vadd.f32 -1.4531521, %v416_v21  ;;  %v1258_v43 = vpop.eup %970  ;;  %v419_v47 = vmul.f32 1.0614054, %v1256_v36 }
 0x105   : > { %v470_v10 = vadd.f32 0.2548296, %v462_v62  ;;  %v825_v17 = vadd.f32 -0.28449672, %v447_v4  ;;  %v460_v24 = vmul.f32 %v1225_v15, %v822_v7  ;;  %v445_v31 = vmul.f32 %v1232_v41, %v437_v14  ;;  %v973_v48 = vpop.eup %972 }
 0x106   : > { %v442_v12 = vadd.f32 1.4214138, %v434_v20  ;;  %v432_v45 = vmul.f32 %v1245_v8, %v818_v32  ;;  %v417_v50 = vmul.f32 1.0614054, %v1258_v43  ;;  %v821_v59 = vadd.f32 -1.4531521, %v419_v47  ;;  %v975_v60 = vpop.eup %974 }
 0x107   : > { %v478_v26 = vmul.f32 %v1220_v5, %v470_v10  ;;  %v463_v9 = vmul.f32 %v1228_v29, %v825_v17  ;;  %v468_v35 = vadd.f32 0.2548296, %v460_v24  ;;  %v823_v42 = vadd.f32 -0.28449672, %v445_v31  ;;  %v977_v10 = vpop.eup %976 }
 0x108   : > { %v450_v19 = vmul.f32 %v1238_v52, %v442_v12  ;;  %v440_v58 = vadd.f32 1.4214138, %v432_v45  ;;  %v819_v61 = vadd.f32 -1.4531521, %v417_v50  ;;  %v435_v6 = vmul.f32 %v1256_v36, %v821_v59  ;;  %v979_v20 = vpop.eup %978 }
 0x109   : > { %v518_v37 = vmul.f32 %v967_v25, %v478_v26  ;;  %v471_v5 = vadd.f32 0.2548296, %v463_v9  ;;  %v461_v49 = vmul.f32 %v1232_v41, %v823_v42  ;;  %v476_v51 = vmul.f32 %v1225_v15, %v468_v35  ;;  %v981_v38 = vpop.eup %980 }
 0x10a   : > { %v828_v56 = vadd.f32 -0.28449672, %v450_v19  ;;  %v448_v4 = vmul.f32 %v1245_v8, %v440_v58  ;;  %v433_v7 = vmul.f32 %v1258_v43, %v819_v61  ;;  %v443_v21 = vadd.f32 1.4214138, %v435_v6 }
 0x10b   : > { %v526_v44 = vsub.f32 1.0, %v518_v37  ;;  %v479_v54 = vmul.f32 %v1228_v29, %v471_v5  ;;  %v469_v1 = vadd.f32 0.2548296, %v461_v49  ;;  %v516_v62 = vmul.f32 %v973_v48, %v476_v51 }
 0x10c   : > { %v466_v3 = vmul.f32 %v1238_v52, %v828_v56  ;;  %v826_v17 = vadd.f32 -0.28449672, %v448_v4  ;;  %v441_v24 = vadd.f32 1.4214138, %v433_v7  ;;  %v359_v48 = vmul.f32 0.5, %v1177_v23 }
 0x10d   : > { %v519_v2 = vmul.f32 %v975_v60, %v479_v54  ;;  %v477_v15 = vmul.f32 %v1232_v41, %v469_v1  ;;  %v524_v29 = vsub.f32 1.0, %v516_v62  ;;  %v542_v11 = vsub.f32 0.0, %v526_v44 }
 0x10e   : > { %v474_v14 = vadd.f32 0.2548296, %v466_v3  ;;  %v464_v12 = vmul.f32 %v1245_v8, %v826_v17  ;;  %v451_v41 = vmul.f32 %v1256_v36, %v443_v21  ;;  %v449_v32 = vmul.f32 %v1258_v43, %v441_v24 }
 0x10f   : > { %v527_v13 = vsub.f32 1.0, %v519_v2  ;;  %v517_v25 = vmul.f32 %v977_v10, %v477_v15  ;;  %v540_v26 = vsub.f32 0.0, %v524_v29  ;;  %v550_v39 = vsel %vm534_vm2, %v542_v11, %v526_v44 }
 0x110   : > { %v482_v9 = vmul.f32 %v1238_v52, %v474_v14  ;;  %v472_v28 = vadd.f32 0.2548296, %v464_v12  ;;  %v829_v45 = vadd.f32 -0.28449672, %v451_v41  ;;  %v827_v52 = vadd.f32 -0.28449672, %v449_v32 }
 0x111   : > { %v543_v31 = vsub.f32 0.0, %v527_v13  ;;  %v525_v35 = vsub.f32 1.0, %v517_v25  ;;  %v548_v37 = vsel %vm532_vm1, %v540_v26, %v524_v29  ;;  %v558_v22 = vadd.f32 1.0, %v550_v39 }
 0x112   : > { %v522_v5 = vmul.f32 %v979_v20, %v482_v9  ;;  %v480_v50 = vmul.f32 %v1245_v8, %v472_v28  ;;  %v556_v49 = vadd.f32 1.0, %v548_v37  ;;  %v467_v51 = vmul.f32 %v1256_v36, %v829_v45  ;;  %v983_v8 = vpop.eup %982 }
 0x113   : > { %v551_v42 = vsel %vm535_vm3, %v543_v31, %v527_v13  ;;  %v541_v47 = vsub.f32 0.0, %v525_v35  ;;  %v465_v18 = vmul.f32 %v1258_v43, %v827_v52  ;;  %v357_v54 = vmul.f32 0.5, %v1181_v27  ;;  %v985_v7 = vpop.eup %984 }
 0x114   : > { %v559_v19 = vadd.f32 1.0, %v551_v42  ;;  %v530_v56 = vsub.f32 1.0, %v522_v5  ;;  %v520_v58 = vmul.f32 %v981_v38, %v480_v50  ;;  %v358_v60 = vmul.f32 0.5, %v1166_v16 }
 0x115   : > { %v549_v44 = vsel %vm533_vm4, %v541_v47, %v525_v35  ;;  %v475_v23 = vadd.f32 0.2548296, %v467_v51  ;;  %v473_v1 = vadd.f32 0.2548296, %v465_v18  ;;  %v564_v33 = vmul.f32 %v556_v49, %v1252_v30 }
 0x116   : > { %v557_v59 = vadd.f32 1.0, %v549_v44  ;;  %v567_v61 = vmul.f32 %v559_v19, %v359_v48  ;;  %v528_v62 = vsub.f32 1.0, %v520_v58  ;;  %v566_v3 = vmul.f32 %v558_v22, %v358_v60 }
 0x117   : > { %v483_v4 = vmul.f32 %v1256_v36, %v475_v23  ;;  %v481_v6 = vmul.f32 %v1258_v43, %v473_v1  ;;  %v546_v27 = vsub.f32 0.0, %v530_v56  ;;  %v360_v24 = vmul.f32 0.5, %v1200_v46  ;;  %v830_v46 = vld [vmem:[%s1361_s4] ss:$0 sm:$0xff] }
 0x118   : > { %v565_v2 = vmul.f32 %v557_v59, %v357_v54  ;;  %v544_v15 = vsub.f32 0.0, %v528_v62  ;;  %v573_v16 = vpack.c.bf16 %v567_v61, %v566_v3  ;;  %v361_v31 = vmul.f32 0.5, %v1209_v57 }
 0x119   : > { %v523_v10 = vmul.f32 %v983_v8, %v483_v4  ;;  %v521_v11 = vmul.f32 %v985_v7, %v481_v6  ;;  %v554_v17 = vsel %vm538_vm6, %v546_v27, %v530_v56  ;;  %v362_v12 = vmul.f32 0.5, %v1191_v34 }
 0x11a   : > { %v572_v29 = vpack.c.bf16 %v565_v2, %v564_v33  ;;  %v552_v13 = vsel %vm536_vm5, %v544_v15, %v528_v62  ;;  %v562_v21 = vadd.f32 1.0, %v554_v17 }
 0x11b   : > { %v531_v30 = vsub.f32 1.0, %v523_v10  ;;  %v529_v14 = vsub.f32 1.0, %v521_v11  ;;  %v560_v43 = vadd.f32 1.0, %v552_v13 }
 0x11c   : > { %891 = vmatprep.mubr.bf16.mxu1 %v572_v29  ;;  %v570_v35 = vmul.f32 %v562_v21, %v362_v12 }
 0x11d   : > { %892 = vmatmul.mubr.bf16.vlgmr.msra.gmra.mxu1 %v573_v16  ;;  %v547_v36 = vsub.f32 0.0, %v531_v30  ;;  %v545_v20 = vsub.f32 0.0, %v529_v14  ;;  %v568_v41 = vmul.f32 %v560_v43, %v360_v24 }
 0x11f   : > { %v555_v53 = vsel %vm539_vm7, %v547_v36, %v531_v30  ;;  %v553_v25 = vsel %vm537_vm8, %v545_v20, %v529_v14 }
 0x120   : > { %v563_v26 = vadd.f32 1.0, %v555_v53  ;;  %v561_v9 = vadd.f32 1.0, %v553_v25 }
 0x122   : > { %v571_v32 = vmul.f32 %v563_v26, %v363_v40  ;;  %v569_v63 = vmul.f32 %v561_v9, %v361_v31 }
 0x124   : > { %v574_v0 = vpack.c.bf16 %v569_v63, %v568_v41  ;;  %v575_v37 = vpack.c.bf16 %v571_v32, %v570_v35 }
 0x126   : > { %895 = vmatprep.mubr.bf16.mxu1 %v574_v0 }
 0x127   : > { %896 = vmatmul.mubr.bf16.gmra.mxu1 %v575_v37 }
 0x1dd   : > { %v893_v55 = vpop.f32.mrf.mxu1 }
 0x1de   : > { %v690_v57 = vadd.f32 %v893_v55, %v830_v46 }
 0x1df   : > { %v681_v38 = vpop.f32.mrf.mxu1 }
 0x1e0   : > { %714 = vst [vmem:[%s218_s26 + $0x10] sm:$0xff] %v690_v57  ;;  %v682_v34 = vadd.f32 %v830_v46, %v681_v38 }
 0x1e1   : > { %v894_v39 = vpop.f32.mrf.mxu1 }
 0x1e2   : > { %712 = vst [vmem:[%s218_s26] sm:$0xff] %v682_v34  ;;  %v693_v42 = vadd.f32 %v894_v39, %v830_v46 }
 0x1e3   : > { %v684_v5 = vpop.f32.mrf.mxu1 }
 0x1e4   : > { %715 = vst [vmem:[%s218_s26 + $0x18] sm:$0xff] %v693_v42  ;;  %v685_v28 = vadd.f32 %v830_v46, %v684_v5 }
 0x1e6   : > { %713 = vst [vmem:[%s218_s26 + $0x8] sm:$0xff] %v685_v28 }
 0x1e7   : > { %v897_v19 = vpop.f32.mrf.mxu1 }
 0x1e8   : > { %v706_v45 = vadd.f32 %v897_v19, %v830_v46 }
 0x1e9   : > { %v697_v52 = vpop.f32.mrf.mxu1 }
 0x1ea   : > { %718 = vst [vmem:[%s218_s26 + $0x30] sm:$0xff] %v706_v45  ;;  %v698_v47 = vadd.f32 %v830_v46, %v697_v52 }
 0x1eb   : > { %v898_v48 = vpop.f32.mrf.mxu1 }
 0x1ec   : > { %716 = vst [vmem:[%s218_s26 + $0x20] sm:$0xff] %v698_v47  ;;  %v709_v50 = vadd.f32 %v898_v48, %v830_v46 }
 0x1ed   : > { %v700_v49 = vpop.f32.mrf.mxu1 }
 0x1ee   : > { %719 = vst [vmem:[%s218_s26 + $0x38] sm:$0xff] %v709_v50  ;;  %v701_v22 = vadd.f32 %v830_v46, %v700_v49 }
 0x1f0   : > { %717 = vst [vmem:[%s218_s26 + $0x28] sm:$0xff] %v701_v22 }
 0x1f1   : > { %999 = shalt.err (!%p996_p3)
}
 0x1f2   : > { %s1000_s14 = scalar_lea.hbm %s1311_s9, 1024  ;;  %s1004_s17 = scalar_lea.hbm %s1362_s5, 2048 }
 0x1f3   : > { %p1001_p4 = scmp.ne.s32.totalorder %s1311_s9, %s1000_s14  ;;  %p1005_p9 = scmp.lt.s32.totalorder %s1311_s9, %s1362_s5 }
 0x1f4   : > { %p1006_p10 = scmp.lt.s32.totalorder %s1004_s17, %s1000_s14 }
 0x1f5   : > { %p1002_p7 = pnand %p1001_p4, %p1119_p5 }
 0x1f6   : > { %p1007_p11 = por %p1006_p10, %p1005_p9 }
 0x1f7   : > { %p1003_p8 = pneg %p1002_p7 }
 0x1f9   : > { %p1008_p12 = pnand %p1007_p11, %p1003_p8 }
 0x1fb   : > { %1011 = shalt.err (!%p1008_p12)
}
 0x1fc   : > { %s1049_s26 = smov 128   ;;  %s1050_s30 = smov 8  }
 0x1fd   : > { %899 = dma.vmem_to_hbm [thread:$0]  (%p1119_p5), %s1313_s6, 1024, %s1311_s9, %s1317_s22, %s1049_s26, %s1049_s26, %s1050_s30  }
 0x1fe PF: > { %p905_p13 = scmp.ge.s32.totalorder %s1046_s21, 2  ;;  %s749_s7 = sand.u32 1, %s1034_s18  }
 0x1ff   : > { %s750_s8 = scalar_lea.sflag [#allocation3], %s749_s7 }
 0x200   : > { %p902_p0 = pnand %p905_p13, %p1123_p6 }
 0x202   : > { %p903_p1 = pneg %p902_p0 }
 0x204   : > { %1029 = dma.done.wait (%p903_p1), %s750_s8, 1024  }
 0x205   : > { %1031 = vsyncadd (%p903_p1), %s750_s8, 4294966272  ;;  %p15_p2 = scmp.ge.s32.totalorder %s1106_s24, 4   ;;  %s1365_s18 = smov %s1038_s19 }
 0x206   : > { %s1366_s19 = smov %s1042_s20  ;;  %s1367_s20 = smov %s1117_s27 }
 0x207   : > { %s1368_s21 = smov %s1106_s24  ;;  %17 = sbr.rel (!%p15_p2) target bundleno = 3 (0x3), region = 75 }
 0x20c   :  { %755 = vsyncpa [#allocation3], 1 }
 0x20d   :  { %757 = vsyncpa [#allocation3 + $0x1], 1 }

</bundles_post_ra>
